<compile_context>
chip_gen: v7x
topology: tpu7x:2x2x1
jax: 0.10.0
libtpu: 0.0.40
codegen_flags: <defaults>
</compile_context>

<pallas_src>
import functools
import math

import jax
import jax.numpy as jnp
from jax.experimental import pallas as pl
from jax.experimental.pallas import tpu as pltpu


def _embedding_gather_kernel(ids_ref, emb_hbm, o_ref, rows_vmem, sems,
                             *, tokens_per_block, scale):
    """Gather `tokens_per_block` embedding rows and write one scaled tile.

    ids_ref  : (N,) int32 token ids in SMEM (scalar-prefetched).
    emb_hbm  : (V, D) embedding table left in HBM (memory_space=pl.ANY).
    o_ref    : (TM, D) output tile in VMEM.
    rows_vmem: (TM, D) VMEM scratch the gather lands in.
    sems     : (TM,) DMA semaphores, one per gathered row.
    """
    base = pl.program_id(0) * tokens_per_block

    # Issue all row DMAs (HBM -> VMEM scratch) up front so they overlap.
    for r in range(tokens_per_block):                 # static unroll (TM=8)
        tok = ids_ref[base + r]                       # scalar read from SMEM
        pltpu.make_async_copy(
            emb_hbm.at[pl.ds(tok, 1), :],             # (1, D) row in HBM
            rows_vmem.at[pl.ds(r, 1), :],             # (1, D) slot in VMEM
            sems.at[r],
        ).start()

    # Wait for every row to land.
    for r in range(tokens_per_block):
        tok = ids_ref[base + r]
        pltpu.make_async_copy(
            emb_hbm.at[pl.ds(tok, 1), :],
            rows_vmem.at[pl.ds(r, 1), :],
            sems.at[r],
        ).wait()

    # One full lane-dense (TM, D) store, scaled by sqrt(d_model).
    o_ref[...] = (rows_vmem[...] * scale).astype(o_ref.dtype)


def embeddings_forward(sen, emb_table, *, tokens_per_block=8):
    """out[s, b, :] = emb_table[sen[s, b], :] * sqrt(d_model)."""
    vocab_size, d_model = emb_table.shape
    scale = math.sqrt(d_model)

    orig_shape = sen.shape
    ids = sen.reshape(-1).astype(jnp.int32)
    n = ids.shape[0]
    n_blocks = pl.cdiv(n, tokens_per_block)
    n_pad = n_blocks * tokens_per_block
    if n_pad != n:
        # Pad the flattened id stream; padded rows are sliced off below.
        ids = jnp.concatenate([ids, jnp.zeros((n_pad - n,), jnp.int32)], axis=0)

    out_flat = pl.pallas_call(
        functools.partial(_embedding_gather_kernel,
                          tokens_per_block=tokens_per_block, scale=scale),
        out_shape=jax.ShapeDtypeStruct((n_pad, d_model), emb_table.dtype),
        grid_spec=pltpu.PrefetchScalarGridSpec(
            num_scalar_prefetch=1,                    # ids -> SMEM before grid
            grid=(n_blocks,),
            in_specs=[pl.BlockSpec(memory_space=pl.ANY)],   # table stays in HBM
            out_specs=pl.BlockSpec((tokens_per_block, d_model),
                                   lambda i, ids: (i, 0)),
            scratch_shapes=[
                pltpu.VMEM((tokens_per_block, d_model), emb_table.dtype),
                pltpu.SemaphoreType.DMA((tokens_per_block,)),
            ],
        ),
        compiler_params=pltpu.CompilerParams(
            dimension_semantics=("parallel",)),
    )(ids, emb_table)

    return out_flat[:n].reshape(*orig_shape, d_model)


if __name__ == "__main__":
    # Small shapes consistent with the module: seq-first (S, B) token ids.
    S, B = 8, 2          # seq_len, batch
    D = 128              # d_model (multiple of 128 -> lane-dense tiles)
    V = 64               # vocab size
    PAD_IDX = 1

    key = jax.random.PRNGKey(0)
    k_emb, k_ids = jax.random.split(key)

    emb_table = (0.1 * jax.random.normal(k_emb, (V, D))).astype(jnp.float32)
    emb_table = emb_table.at[PAD_IDX].set(0.0)   # padding_idx row is zeros

    sen = jax.random.randint(k_ids, (S, B), 0, V, dtype=jnp.int32)
    sen = sen.at[S - 1, :].set(PAD_IDX)          # exercise the pad row

    out = embeddings_forward(sen, emb_table)
    out = jax.block_until_ready(out)

    # Pure-JAX reference (transposes cancel for a pointwise lookup).
    ref = emb_table[sen] * math.sqrt(D)
    assert out.shape == (S, B, D)
    assert jnp.allclose(out, ref, atol=1e-6, rtol=1e-6), "mismatch vs reference"
    assert jnp.all(out[S - 1] == 0.0), "pad tokens must embed to zeros"

    print("KERNEL_OK")
</pallas_src>

<mosaic_0001>
module attributes {stable_mosaic.version = 11 : i64} {
  func.func @_embedding_gather_kernel(%arg0: i32, %arg1: memref<16xi32, #tpu.memory_space<smem>>, %arg2: memref<64x128xf32, #tpu.memory_space<any>>, %arg3: memref<8x128xf32, #tpu.memory_space<vmem>>, %arg4: memref<8x128xf32, #tpu.memory_space<vmem>>, %arg5: memref<8x!tpu.dma_semaphore, #tpu.memory_space<semaphore_mem>>) attributes {dimension_semantics = [#tpu.dimension_semantics<parallel>], iteration_bounds = array<i64: 2>, scalar_prefetch = 1 : i64, scratch_operands = 2 : i64, tpu.core_type = #tpu.core_type<tc>, window_params = [{}, {transform_indices = @transform_1, window_bounds = array<i64: 8, 128>}]} {
    %c8_i32 = arith.constant 8 : i32
    %0 = arith.muli %arg0, %c8_i32 : i32
    %c0_i32 = arith.constant 0 : i32
    %1 = arith.addi %0, %c0_i32 : i32
    %2 = arith.index_cast %1 : i32 to index
    %3 = memref.load %arg1[%2] : memref<16xi32, #tpu.memory_space<smem>>
    %c0_i32_0 = arith.constant 0 : i32
    %c0_i32_1 = arith.constant 0 : i32
    %4 = tpu.memref_slice %arg2[%3, %c0_i32_1] : memref<64x128xf32, #tpu.memory_space<any>> -> memref<1x128xf32, #tpu.memory_space<any>>
    %c0_i32_2 = arith.constant 0 : i32
    %c0_i32_3 = arith.constant 0 : i32
    %5 = tpu.memref_slice %arg4[%c0_i32_2, %c0_i32_3] : memref<8x128xf32, #tpu.memory_space<vmem>> -> memref<1x128xf32, #tpu.memory_space<vmem>>
    %6 = tpu.memref_slice %arg5[%c0_i32_0] : memref<8x!tpu.dma_semaphore, #tpu.memory_space<semaphore_mem>> -> memref<1x!tpu.dma_semaphore, #tpu.memory_space<semaphore_mem>>
    %7 = tpu.memref_squeeze %6 : memref<1x!tpu.dma_semaphore, #tpu.memory_space<semaphore_mem>> -> memref<!tpu.dma_semaphore, #tpu.memory_space<semaphore_mem>>
    tpu.enqueue_dma source(%4 : memref<1x128xf32, #tpu.memory_space<any>>) target(%5 : memref<1x128xf32, #tpu.memory_space<vmem>>) target_semaphore(%7 : memref<!tpu.dma_semaphore, #tpu.memory_space<semaphore_mem>>)
    %c1_i32 = arith.constant 1 : i32
    %8 = arith.addi %0, %c1_i32 : i32
    %9 = arith.index_cast %8 : i32 to index
    %10 = memref.load %arg1[%9] : memref<16xi32, #tpu.memory_space<smem>>
    %c1_i32_4 = arith.constant 1 : i32
    %c0_i32_5 = arith.constant 0 : i32
    %11 = tpu.memref_slice %arg2[%10, %c0_i32_5] : memref<64x128xf32, #tpu.memory_space<any>> -> memref<1x128xf32, #tpu.memory_space<any>>
    %c1_i32_6 = arith.constant 1 : i32
    %c0_i32_7 = arith.constant 0 : i32
    %12 = tpu.memref_slice %arg4[%c1_i32_6, %c0_i32_7] : memref<8x128xf32, #tpu.memory_space<vmem>> -> memref<1x128xf32, #tpu.memory_space<vmem>>
    %13 = tpu.memref_slice %arg5[%c1_i32_4] : memref<8x!tpu.dma_semaphore, #tpu.memory_space<semaphore_mem>> -> memref<1x!tpu.dma_semaphore, #tpu.memory_space<semaphore_mem>>
    %14 = tpu.memref_squeeze %13 : memref<1x!tpu.dma_semaphore, #tpu.memory_space<semaphore_mem>> -> memref<!tpu.dma_semaphore, #tpu.memory_space<semaphore_mem>>
    tpu.enqueue_dma source(%11 : memref<1x128xf32, #tpu.memory_space<any>>) target(%12 : memref<1x128xf32, #tpu.memory_space<vmem>>) target_semaphore(%14 : memref<!tpu.dma_semaphore, #tpu.memory_space<semaphore_mem>>)
    %c2_i32 = arith.constant 2 : i32
    %15 = arith.addi %0, %c2_i32 : i32
    %16 = arith.index_cast %15 : i32 to index
    %17 = memref.load %arg1[%16] : memref<16xi32, #tpu.memory_space<smem>>
    %c2_i32_8 = arith.constant 2 : i32
    %c0_i32_9 = arith.constant 0 : i32
    %18 = tpu.memref_slice %arg2[%17, %c0_i32_9] : memref<64x128xf32, #tpu.memory_space<any>> -> memref<1x128xf32, #tpu.memory_space<any>>
    %c2_i32_10 = arith.constant 2 : i32
    %c0_i32_11 = arith.constant 0 : i32
    %19 = tpu.memref_slice %arg4[%c2_i32_10, %c0_i32_11] : memref<8x128xf32, #tpu.memory_space<vmem>> -> memref<1x128xf32, #tpu.memory_space<vmem>>
    %20 = tpu.memref_slice %arg5[%c2_i32_8] : memref<8x!tpu.dma_semaphore, #tpu.memory_space<semaphore_mem>> -> memref<1x!tpu.dma_semaphore, #tpu.memory_space<semaphore_mem>>
    %21 = tpu.memref_squeeze %20 : memref<1x!tpu.dma_semaphore, #tpu.memory_space<semaphore_mem>> -> memref<!tpu.dma_semaphore, #tpu.memory_space<semaphore_mem>>
    tpu.enqueue_dma source(%18 : memref<1x128xf32, #tpu.memory_space<any>>) target(%19 : memref<1x128xf32, #tpu.memory_space<vmem>>) target_semaphore(%21 : memref<!tpu.dma_semaphore, #tpu.memory_space<semaphore_mem>>)
    %c3_i32 = arith.constant 3 : i32
    %22 = arith.addi %0, %c3_i32 : i32
    %23 = arith.index_cast %22 : i32 to index
    %24 = memref.load %arg1[%23] : memref<16xi32, #tpu.memory_space<smem>>
    %c3_i32_12 = arith.constant 3 : i32
    %c0_i32_13 = arith.constant 0 : i32
    %25 = tpu.memref_slice %arg2[%24, %c0_i32_13] : memref<64x128xf32, #tpu.memory_space<any>> -> memref<1x128xf32, #tpu.memory_space<any>>
    %c3_i32_14 = arith.constant 3 : i32
    %c0_i32_15 = arith.constant 0 : i32
    %26 = tpu.memref_slice %arg4[%c3_i32_14, %c0_i32_15] : memref<8x128xf32, #tpu.memory_space<vmem>> -> memref<1x128xf32, #tpu.memory_space<vmem>>
    %27 = tpu.memref_slice %arg5[%c3_i32_12] : memref<8x!tpu.dma_semaphore, #tpu.memory_space<semaphore_mem>> -> memref<1x!tpu.dma_semaphore, #tpu.memory_space<semaphore_mem>>
    %28 = tpu.memref_squeeze %27 : memref<1x!tpu.dma_semaphore, #tpu.memory_space<semaphore_mem>> -> memref<!tpu.dma_semaphore, #tpu.memory_space<semaphore_mem>>
    tpu.enqueue_dma source(%25 : memref<1x128xf32, #tpu.memory_space<any>>) target(%26 : memref<1x128xf32, #tpu.memory_space<vmem>>) target_semaphore(%28 : memref<!tpu.dma_semaphore, #tpu.memory_space<semaphore_mem>>)
    %c4_i32 = arith.constant 4 : i32
    %29 = arith.addi %0, %c4_i32 : i32
    %30 = arith.index_cast %29 : i32 to index
    %31 = memref.load %arg1[%30] : memref<16xi32, #tpu.memory_space<smem>>
    %c4_i32_16 = arith.constant 4 : i32
    %c0_i32_17 = arith.constant 0 : i32
    %32 = tpu.memref_slice %arg2[%31, %c0_i32_17] : memref<64x128xf32, #tpu.memory_space<any>> -> memref<1x128xf32, #tpu.memory_space<any>>
    %c4_i32_18 = arith.constant 4 : i32
    %c0_i32_19 = arith.constant 0 : i32
    %33 = tpu.memref_slice %arg4[%c4_i32_18, %c0_i32_19] : memref<8x128xf32, #tpu.memory_space<vmem>> -> memref<1x128xf32, #tpu.memory_space<vmem>>
    %34 = tpu.memref_slice %arg5[%c4_i32_16] : memref<8x!tpu.dma_semaphore, #tpu.memory_space<semaphore_mem>> -> memref<1x!tpu.dma_semaphore, #tpu.memory_space<semaphore_mem>>
    %35 = tpu.memref_squeeze %34 : memref<1x!tpu.dma_semaphore, #tpu.memory_space<semaphore_mem>> -> memref<!tpu.dma_semaphore, #tpu.memory_space<semaphore_mem>>
    tpu.enqueue_dma source(%32 : memref<1x128xf32, #tpu.memory_space<any>>) target(%33 : memref<1x128xf32, #tpu.memory_space<vmem>>) target_semaphore(%35 : memref<!tpu.dma_semaphore, #tpu.memory_space<semaphore_mem>>)
    %c5_i32 = arith.constant 5 : i32
    %36 = arith.addi %0, %c5_i32 : i32
    %37 = arith.index_cast %36 : i32 to index
    %38 = memref.load %arg1[%37] : memref<16xi32, #tpu.memory_space<smem>>
    %c5_i32_20 = arith.constant 5 : i32
    %c0_i32_21 = arith.constant 0 : i32
    %39 = tpu.memref_slice %arg2[%38, %c0_i32_21] : memref<64x128xf32, #tpu.memory_space<any>> -> memref<1x128xf32, #tpu.memory_space<any>>
    %c5_i32_22 = arith.constant 5 : i32
    %c0_i32_23 = arith.constant 0 : i32
    %40 = tpu.memref_slice %arg4[%c5_i32_22, %c0_i32_23] : memref<8x128xf32, #tpu.memory_space<vmem>> -> memref<1x128xf32, #tpu.memory_space<vmem>>
    %41 = tpu.memref_slice %arg5[%c5_i32_20] : memref<8x!tpu.dma_semaphore, #tpu.memory_space<semaphore_mem>> -> memref<1x!tpu.dma_semaphore, #tpu.memory_space<semaphore_mem>>
    %42 = tpu.memref_squeeze %41 : memref<1x!tpu.dma_semaphore, #tpu.memory_space<semaphore_mem>> -> memref<!tpu.dma_semaphore, #tpu.memory_space<semaphore_mem>>
    tpu.enqueue_dma source(%39 : memref<1x128xf32, #tpu.memory_space<any>>) target(%40 : memref<1x128xf32, #tpu.memory_space<vmem>>) target_semaphore(%42 : memref<!tpu.dma_semaphore, #tpu.memory_space<semaphore_mem>>)
    %c6_i32 = arith.constant 6 : i32
    %43 = arith.addi %0, %c6_i32 : i32
    %44 = arith.index_cast %43 : i32 to index
    %45 = memref.load %arg1[%44] : memref<16xi32, #tpu.memory_space<smem>>
    %c6_i32_24 = arith.constant 6 : i32
    %c0_i32_25 = arith.constant 0 : i32
    %46 = tpu.memref_slice %arg2[%45, %c0_i32_25] : memref<64x128xf32, #tpu.memory_space<any>> -> memref<1x128xf32, #tpu.memory_space<any>>
    %c6_i32_26 = arith.constant 6 : i32
    %c0_i32_27 = arith.constant 0 : i32
    %47 = tpu.memref_slice %arg4[%c6_i32_26, %c0_i32_27] : memref<8x128xf32, #tpu.memory_space<vmem>> -> memref<1x128xf32, #tpu.memory_space<vmem>>
    %48 = tpu.memref_slice %arg5[%c6_i32_24] : memref<8x!tpu.dma_semaphore, #tpu.memory_space<semaphore_mem>> -> memref<1x!tpu.dma_semaphore, #tpu.memory_space<semaphore_mem>>
    %49 = tpu.memref_squeeze %48 : memref<1x!tpu.dma_semaphore, #tpu.memory_space<semaphore_mem>> -> memref<!tpu.dma_semaphore, #tpu.memory_space<semaphore_mem>>
    tpu.enqueue_dma source(%46 : memref<1x128xf32, #tpu.memory_space<any>>) target(%47 : memref<1x128xf32, #tpu.memory_space<vmem>>) target_semaphore(%49 : memref<!tpu.dma_semaphore, #tpu.memory_space<semaphore_mem>>)
    %c7_i32 = arith.constant 7 : i32
    %50 = arith.addi %0, %c7_i32 : i32
    %51 = arith.index_cast %50 : i32 to index
    %52 = memref.load %arg1[%51] : memref<16xi32, #tpu.memory_space<smem>>
    %c7_i32_28 = arith.constant 7 : i32
    %c0_i32_29 = arith.constant 0 : i32
    %53 = tpu.memref_slice %arg2[%52, %c0_i32_29] : memref<64x128xf32, #tpu.memory_space<any>> -> memref<1x128xf32, #tpu.memory_space<any>>
    %c7_i32_30 = arith.constant 7 : i32
    %c0_i32_31 = arith.constant 0 : i32
    %54 = tpu.memref_slice %arg4[%c7_i32_30, %c0_i32_31] : memref<8x128xf32, #tpu.memory_space<vmem>> -> memref<1x128xf32, #tpu.memory_space<vmem>>
    %55 = tpu.memref_slice %arg5[%c7_i32_28] : memref<8x!tpu.dma_semaphore, #tpu.memory_space<semaphore_mem>> -> memref<1x!tpu.dma_semaphore, #tpu.memory_space<semaphore_mem>>
    %56 = tpu.memref_squeeze %55 : memref<1x!tpu.dma_semaphore, #tpu.memory_space<semaphore_mem>> -> memref<!tpu.dma_semaphore, #tpu.memory_space<semaphore_mem>>
    tpu.enqueue_dma source(%53 : memref<1x128xf32, #tpu.memory_space<any>>) target(%54 : memref<1x128xf32, #tpu.memory_space<vmem>>) target_semaphore(%56 : memref<!tpu.dma_semaphore, #tpu.memory_space<semaphore_mem>>)
    %c0_i32_32 = arith.constant 0 : i32
    %57 = arith.addi %0, %c0_i32_32 : i32
    %58 = arith.index_cast %57 : i32 to index
    %59 = memref.load %arg1[%58] : memref<16xi32, #tpu.memory_space<smem>>
    %c0_i32_33 = arith.constant 0 : i32
    %c0_i32_34 = arith.constant 0 : i32
    %60 = tpu.memref_slice %arg2[%59, %c0_i32_34] : memref<64x128xf32, #tpu.memory_space<any>> -> memref<1x128xf32, #tpu.memory_space<any>>
    %c0_i32_35 = arith.constant 0 : i32
    %c0_i32_36 = arith.constant 0 : i32
    %61 = tpu.memref_slice %arg4[%c0_i32_35, %c0_i32_36] : memref<8x128xf32, #tpu.memory_space<vmem>> -> memref<1x128xf32, #tpu.memory_space<vmem>>
    %62 = tpu.memref_slice %arg5[%c0_i32_33] : memref<8x!tpu.dma_semaphore, #tpu.memory_space<semaphore_mem>> -> memref<1x!tpu.dma_semaphore, #tpu.memory_space<semaphore_mem>>
    %63 = tpu.memref_squeeze %62 : memref<1x!tpu.dma_semaphore, #tpu.memory_space<semaphore_mem>> -> memref<!tpu.dma_semaphore, #tpu.memory_space<semaphore_mem>>
    tpu.wait_dma2 semaphore(%63 : memref<!tpu.dma_semaphore, #tpu.memory_space<semaphore_mem>>) src(%60 : memref<1x128xf32, #tpu.memory_space<any>>) dst(%61 : memref<1x128xf32, #tpu.memory_space<vmem>>)
    %c1_i32_37 = arith.constant 1 : i32
    %64 = arith.addi %0, %c1_i32_37 : i32
    %65 = arith.index_cast %64 : i32 to index
    %66 = memref.load %arg1[%65] : memref<16xi32, #tpu.memory_space<smem>>
    %c1_i32_38 = arith.constant 1 : i32
    %c0_i32_39 = arith.constant 0 : i32
    %67 = tpu.memref_slice %arg2[%66, %c0_i32_39] : memref<64x128xf32, #tpu.memory_space<any>> -> memref<1x128xf32, #tpu.memory_space<any>>
    %c1_i32_40 = arith.constant 1 : i32
    %c0_i32_41 = arith.constant 0 : i32
    %68 = tpu.memref_slice %arg4[%c1_i32_40, %c0_i32_41] : memref<8x128xf32, #tpu.memory_space<vmem>> -> memref<1x128xf32, #tpu.memory_space<vmem>>
    %69 = tpu.memref_slice %arg5[%c1_i32_38] : memref<8x!tpu.dma_semaphore, #tpu.memory_space<semaphore_mem>> -> memref<1x!tpu.dma_semaphore, #tpu.memory_space<semaphore_mem>>
    %70 = tpu.memref_squeeze %69 : memref<1x!tpu.dma_semaphore, #tpu.memory_space<semaphore_mem>> -> memref<!tpu.dma_semaphore, #tpu.memory_space<semaphore_mem>>
    tpu.wait_dma2 semaphore(%70 : memref<!tpu.dma_semaphore, #tpu.memory_space<semaphore_mem>>) src(%67 : memref<1x128xf32, #tpu.memory_space<any>>) dst(%68 : memref<1x128xf32, #tpu.memory_space<vmem>>)
    %c2_i32_42 = arith.constant 2 : i32
    %71 = arith.addi %0, %c2_i32_42 : i32
    %72 = arith.index_cast %71 : i32 to index
    %73 = memref.load %arg1[%72] : memref<16xi32, #tpu.memory_space<smem>>
    %c2_i32_43 = arith.constant 2 : i32
    %c0_i32_44 = arith.constant 0 : i32
    %74 = tpu.memref_slice %arg2[%73, %c0_i32_44] : memref<64x128xf32, #tpu.memory_space<any>> -> memref<1x128xf32, #tpu.memory_space<any>>
    %c2_i32_45 = arith.constant 2 : i32
    %c0_i32_46 = arith.constant 0 : i32
    %75 = tpu.memref_slice %arg4[%c2_i32_45, %c0_i32_46] : memref<8x128xf32, #tpu.memory_space<vmem>> -> memref<1x128xf32, #tpu.memory_space<vmem>>
    %76 = tpu.memref_slice %arg5[%c2_i32_43] : memref<8x!tpu.dma_semaphore, #tpu.memory_space<semaphore_mem>> -> memref<1x!tpu.dma_semaphore, #tpu.memory_space<semaphore_mem>>
    %77 = tpu.memref_squeeze %76 : memref<1x!tpu.dma_semaphore, #tpu.memory_space<semaphore_mem>> -> memref<!tpu.dma_semaphore, #tpu.memory_space<semaphore_mem>>
    tpu.wait_dma2 semaphore(%77 : memref<!tpu.dma_semaphore, #tpu.memory_space<semaphore_mem>>) src(%74 : memref<1x128xf32, #tpu.memory_space<any>>) dst(%75 : memref<1x128xf32, #tpu.memory_space<vmem>>)
    %c3_i32_47 = arith.constant 3 : i32
    %78 = arith.addi %0, %c3_i32_47 : i32
    %79 = arith.index_cast %78 : i32 to index
    %80 = memref.load %arg1[%79] : memref<16xi32, #tpu.memory_space<smem>>
    %c3_i32_48 = arith.constant 3 : i32
    %c0_i32_49 = arith.constant 0 : i32
    %81 = tpu.memref_slice %arg2[%80, %c0_i32_49] : memref<64x128xf32, #tpu.memory_space<any>> -> memref<1x128xf32, #tpu.memory_space<any>>
    %c3_i32_50 = arith.constant 3 : i32
    %c0_i32_51 = arith.constant 0 : i32
    %82 = tpu.memref_slice %arg4[%c3_i32_50, %c0_i32_51] : memref<8x128xf32, #tpu.memory_space<vmem>> -> memref<1x128xf32, #tpu.memory_space<vmem>>
    %83 = tpu.memref_slice %arg5[%c3_i32_48] : memref<8x!tpu.dma_semaphore, #tpu.memory_space<semaphore_mem>> -> memref<1x!tpu.dma_semaphore, #tpu.memory_space<semaphore_mem>>
    %84 = tpu.memref_squeeze %83 : memref<1x!tpu.dma_semaphore, #tpu.memory_space<semaphore_mem>> -> memref<!tpu.dma_semaphore, #tpu.memory_space<semaphore_mem>>
    tpu.wait_dma2 semaphore(%84 : memref<!tpu.dma_semaphore, #tpu.memory_space<semaphore_mem>>) src(%81 : memref<1x128xf32, #tpu.memory_space<any>>) dst(%82 : memref<1x128xf32, #tpu.memory_space<vmem>>)
    %c4_i32_52 = arith.constant 4 : i32
    %85 = arith.addi %0, %c4_i32_52 : i32
    %86 = arith.index_cast %85 : i32 to index
    %87 = memref.load %arg1[%86] : memref<16xi32, #tpu.memory_space<smem>>
    %c4_i32_53 = arith.constant 4 : i32
    %c0_i32_54 = arith.constant 0 : i32
    %88 = tpu.memref_slice %arg2[%87, %c0_i32_54] : memref<64x128xf32, #tpu.memory_space<any>> -> memref<1x128xf32, #tpu.memory_space<any>>
    %c4_i32_55 = arith.constant 4 : i32
    %c0_i32_56 = arith.constant 0 : i32
    %89 = tpu.memref_slice %arg4[%c4_i32_55, %c0_i32_56] : memref<8x128xf32, #tpu.memory_space<vmem>> -> memref<1x128xf32, #tpu.memory_space<vmem>>
    %90 = tpu.memref_slice %arg5[%c4_i32_53] : memref<8x!tpu.dma_semaphore, #tpu.memory_space<semaphore_mem>> -> memref<1x!tpu.dma_semaphore, #tpu.memory_space<semaphore_mem>>
    %91 = tpu.memref_squeeze %90 : memref<1x!tpu.dma_semaphore, #tpu.memory_space<semaphore_mem>> -> memref<!tpu.dma_semaphore, #tpu.memory_space<semaphore_mem>>
    tpu.wait_dma2 semaphore(%91 : memref<!tpu.dma_semaphore, #tpu.memory_space<semaphore_mem>>) src(%88 : memref<1x128xf32, #tpu.memory_space<any>>) dst(%89 : memref<1x128xf32, #tpu.memory_space<vmem>>)
    %c5_i32_57 = arith.constant 5 : i32
    %92 = arith.addi %0, %c5_i32_57 : i32
    %93 = arith.index_cast %92 : i32 to index
    %94 = memref.load %arg1[%93] : memref<16xi32, #tpu.memory_space<smem>>
    %c5_i32_58 = arith.constant 5 : i32
    %c0_i32_59 = arith.constant 0 : i32
    %95 = tpu.memref_slice %arg2[%94, %c0_i32_59] : memref<64x128xf32, #tpu.memory_space<any>> -> memref<1x128xf32, #tpu.memory_space<any>>
    %c5_i32_60 = arith.constant 5 : i32
    %c0_i32_61 = arith.constant 0 : i32
    %96 = tpu.memref_slice %arg4[%c5_i32_60, %c0_i32_61] : memref<8x128xf32, #tpu.memory_space<vmem>> -> memref<1x128xf32, #tpu.memory_space<vmem>>
    %97 = tpu.memref_slice %arg5[%c5_i32_58] : memref<8x!tpu.dma_semaphore, #tpu.memory_space<semaphore_mem>> -> memref<1x!tpu.dma_semaphore, #tpu.memory_space<semaphore_mem>>
    %98 = tpu.memref_squeeze %97 : memref<1x!tpu.dma_semaphore, #tpu.memory_space<semaphore_mem>> -> memref<!tpu.dma_semaphore, #tpu.memory_space<semaphore_mem>>
    tpu.wait_dma2 semaphore(%98 : memref<!tpu.dma_semaphore, #tpu.memory_space<semaphore_mem>>) src(%95 : memref<1x128xf32, #tpu.memory_space<any>>) dst(%96 : memref<1x128xf32, #tpu.memory_space<vmem>>)
    %c6_i32_62 = arith.constant 6 : i32
    %99 = arith.addi %0, %c6_i32_62 : i32
    %100 = arith.index_cast %99 : i32 to index
    %101 = memref.load %arg1[%100] : memref<16xi32, #tpu.memory_space<smem>>
    %c6_i32_63 = arith.constant 6 : i32
    %c0_i32_64 = arith.constant 0 : i32
    %102 = tpu.memref_slice %arg2[%101, %c0_i32_64] : memref<64x128xf32, #tpu.memory_space<any>> -> memref<1x128xf32, #tpu.memory_space<any>>
    %c6_i32_65 = arith.constant 6 : i32
    %c0_i32_66 = arith.constant 0 : i32
    %103 = tpu.memref_slice %arg4[%c6_i32_65, %c0_i32_66] : memref<8x128xf32, #tpu.memory_space<vmem>> -> memref<1x128xf32, #tpu.memory_space<vmem>>
    %104 = tpu.memref_slice %arg5[%c6_i32_63] : memref<8x!tpu.dma_semaphore, #tpu.memory_space<semaphore_mem>> -> memref<1x!tpu.dma_semaphore, #tpu.memory_space<semaphore_mem>>
    %105 = tpu.memref_squeeze %104 : memref<1x!tpu.dma_semaphore, #tpu.memory_space<semaphore_mem>> -> memref<!tpu.dma_semaphore, #tpu.memory_space<semaphore_mem>>
    tpu.wait_dma2 semaphore(%105 : memref<!tpu.dma_semaphore, #tpu.memory_space<semaphore_mem>>) src(%102 : memref<1x128xf32, #tpu.memory_space<any>>) dst(%103 : memref<1x128xf32, #tpu.memory_space<vmem>>)
    %c7_i32_67 = arith.constant 7 : i32
    %106 = arith.addi %0, %c7_i32_67 : i32
    %107 = arith.index_cast %106 : i32 to index
    %108 = memref.load %arg1[%107] : memref<16xi32, #tpu.memory_space<smem>>
    %c7_i32_68 = arith.constant 7 : i32
    %c0_i32_69 = arith.constant 0 : i32
    %109 = tpu.memref_slice %arg2[%108, %c0_i32_69] : memref<64x128xf32, #tpu.memory_space<any>> -> memref<1x128xf32, #tpu.memory_space<any>>
    %c7_i32_70 = arith.constant 7 : i32
    %c0_i32_71 = arith.constant 0 : i32
    %110 = tpu.memref_slice %arg4[%c7_i32_70, %c0_i32_71] : memref<8x128xf32, #tpu.memory_space<vmem>> -> memref<1x128xf32, #tpu.memory_space<vmem>>
    %111 = tpu.memref_slice %arg5[%c7_i32_68] : memref<8x!tpu.dma_semaphore, #tpu.memory_space<semaphore_mem>> -> memref<1x!tpu.dma_semaphore, #tpu.memory_space<semaphore_mem>>
    %112 = tpu.memref_squeeze %111 : memref<1x!tpu.dma_semaphore, #tpu.memory_space<semaphore_mem>> -> memref<!tpu.dma_semaphore, #tpu.memory_space<semaphore_mem>>
    tpu.wait_dma2 semaphore(%112 : memref<!tpu.dma_semaphore, #tpu.memory_space<semaphore_mem>>) src(%109 : memref<1x128xf32, #tpu.memory_space<any>>) dst(%110 : memref<1x128xf32, #tpu.memory_space<vmem>>)
    %c0 = arith.constant 0 : index
    %c0_72 = arith.constant 0 : index
    %113 = vector.load %arg4[%c0, %c0_72] : memref<8x128xf32, #tpu.memory_space<vmem>>, vector<8x128xf32>
    %cst = arith.constant 11.3137083 : f32
    %114 = vector.broadcast %cst : f32 to vector<8x128xf32>
    %115 = arith.mulf %113, %114 : vector<8x128xf32>
    %c0_73 = arith.constant 0 : index
    %c0_74 = arith.constant 0 : index
    %116 = vector.load %arg3[%c0_73, %c0_74] : memref<8x128xf32, #tpu.memory_space<vmem>>, vector<8x128xf32>
    tpu.vector_store %arg3[%c0_73, %c0_74], %115 {strides = array<i32>} : memref<8x128xf32, #tpu.memory_space<vmem>>, vector<8x128xf32>,
    return
  }
  func.func @transform_1(%arg0: i32, %arg1: memref<16xi32, #tpu.memory_space<smem>>) -> (i32, i32) {
    %c0_i32 = arith.constant 0 : i32
    %c0_i32_0 = arith.constant 0 : i32
    return %arg0, %c0_i32 : i32, i32
  }
}

</mosaic_0001>

<bundles_post_ra>
// kernel: tpu_custom_call.1
= control target key start
LH: loop header
LB: loop body
LE: loop exit
PB: predicated region body
PF: predicated region fallthrough
CT: control target
= control target key end

     0   :  { %s935_s0 = inlined_call_operand.hbm [shape: s32[16], index: 0, kind: input, shape index: {}]   ;;  %s936_s1 = inlined_call_operand.hbm [shape: f32[64,128], index: 1, kind: input, shape index: {}]   ;;  %s937_s2 = inlined_call_operand.hbm [shape: f32[16,128], index: 2, kind: output, shape index: {}]  }
   0x1   :  { %s407_s11 = scalar_lea.hbm %s935_s0, 16 }
   0x2   :  { %p408_p0 = scmp.ne.s32.totalorder %s935_s0, %s407_s11  ;;  %p411_p1 = scmp.lt.u32.totalorder %s407_s11, %s935_s0 }
   0x4   :  { %p413_p2 = pnand %p411_p1, %p408_p0 }
   0x6   :  { %416 = shalt.err (!%p413_p2)  }
   0x7   :  { %s683_s16 = smov [#allocation5]  }
   0x8   :  { %8 = dma.hbm_to_smem %s935_s0, 16, %s683_s16, [#allocation4] }
   0x9   :  { %649 = dma.done.wait [#allocation4], 16 }
   0xa   :  { %650 = vsyncadd [#allocation4], 4294967280 }
   0xb   :  { %10 = sfence }
   0xc   :  { %11 = vsyncpa [#allocation7], 0 }
   0xd   :  { %13 = vsyncpa [#allocation7 + $0x1], 0  ;;  %s720_s19 = smov 0   ;;  %s722_s20 = smov 0  }
   0xe   :  { %s724_s21 = smov 0  }
   0xf LB: > { %s342_s0 = sadd.s32 4294967295, %s681_s21   ;;  %s737_s22 = sadd.s32 1, %s681_s21   ;;  %s681_s21 = sphi %s724_s21, %s942_s21   ;;  %s677_s20 = sphi %s722_s20, %s941_s20   ;;  %s673_s19 = sphi %s720_s19, %s940_s19  }
  0x10   : > { %s22_s23 = ssub.s32 %s681_s21, %s737_s22  ;;  %s25_s24 = sadd.s32 1, %s677_s20 }
  0x11   : > { %p23_p3 = scmp.eq.s32.totalorder %s22_s23, 0  ;;  %p343_p4 = scmp.ne.s32.totalorder %s22_s23, 0 }
  0x12   : > { %p29_p5 = scmp.eq.s32.totalorder %s681_s21, 1  ;;  %p34_p6 = scmp.ne.s32.totalorder %s677_s20, %s673_s19 }
  0x13   : > { %s746_s25 = scalar_select %p23_p3, %s677_s20, %s25_s24  }
  0x14   : > { %p748_p7 = por %p343_p4, %p29_p5  ;;  %p35_p8 = scmp.eq.s32.totalorder %s342_s0, 1 }
  0x15   : > { %p344_p10 = scmp.ge.s32.totalorder %s681_s21, 2 }
  0x16   : > { %p752_p9 = por %p35_p8, %p34_p6  ;;  %s49_s28 = sand.u32 (!%p344_p10), 1, %s677_s20  }
  0x17   : > { %44 = sbr.rel (%p344_p10) target bundleno = 244 (0xf4), region = 12  ;;  %s759_s29 = sshll.u32 (!%p344_p10), %s681_s21, 3 }
  0x18   : > { %s763_s30 = sshll.u32 (!%p344_p10), %s49_s28, 3  ;;  %s53_s3 = sld [smem:[#allocation5 + %s759_s29]] (!%p344_p10) }
  0x19   : > { %s684_s4 = smov (!%p344_p10), [#allocation2]   ;;  %s67_s6 = sadd.s32 (!%p344_p10), 1, %s759_s29 }
  0x1a   : > { %s63_s5 = sshll.u32 (!%p344_p10), %s684_s4, 4  ;;  %s769_s7 = sld [smem:[#allocation5 + %s67_s6]] (!%p344_p10)  ;;  %s767_s5 = int_to_ptr.vmem [resolvable:$true] %s63_s5 }
  0x1b   : > { %s84_s8 = sadd.s32 (!%p344_p10), 2, %s759_s29  ;;  %s685_s9 = smov (!%p344_p10), [#allocation2 + $0x1]  }
  0x1c   : > { %s80_s10 = sshll.u32 (!%p344_p10), %s685_s9, 4  ;;  %s772_s11 = sld [smem:[#allocation5 + %s84_s8]] (!%p344_p10)  ;;  %s774_s10 = int_to_ptr.vmem [resolvable:$true] %s80_s10 }
  0x1d   : > { %s782_s0 = scalar_lea.hbm (!%p344_p10), %s936_s1, 1024 }
  0x1e   : > { %s347_s12 = sshll.u32 %s53_s3, 4 }
  0x1f   : > { %s55_s15 = scalar_lea.hbm %s936_s1, %s347_s12 }
  0x20   : > { %s417_s16 = scalar_lea.hbm %s55_s15, 16  ;;  %p420_p12 = scmp.lt.u32.totalorder %s55_s15, %s936_s1 }
  0x21   : > { %p418_p11 = scmp.ne.s32.totalorder %s55_s15, %s417_s16  ;;  %p421_p13 = scmp.lt.u32.totalorder %s782_s0, %s417_s16 }
  0x22   : > { %p423_p1 = scmp.lt.u32.totalorder %s417_s16, %s55_s15 }
  0x23   : > { %p422_p0 = por %p421_p13, %p420_p12 }
  0x25   : > { %p424_p2 = por %p423_p1, %p422_p0 }
  0x27   : > { %p425_p3 = pnand %p424_p2, %p418_p11 }
  0x29   : > { %428 = shalt.err (!%p425_p3)  }
  0x2a   : > { %s429_s3 = scalar_lea.vmem %s767_s5, 16  ;;  %s791_s4 = scalar_lea.vmem %s767_s5, 128 }
  0x2b   : > { %p430_p4 = scmp.ne.s32.totalorder %s767_s5, %s429_s3  ;;  %p434_p5 = scmp.lt.s32.totalorder %s767_s5, %s767_s5 }
  0x2c   : > { %p435_p6 = scmp.lt.s32.totalorder %s791_s4, %s429_s3 }
  0x2e   : > { %p436_p8 = por %p435_p6, %p434_p5 }
  0x30   : > { %p437_p10 = pnand %p436_p8, %p430_p4 }
  0x32   : > { %440 = shalt.err (!%p437_p10)  }
  0x33   : > { %66 = dma.hbm_to_vmem [thread:$0]  %s55_s15, 16, %s767_s5, [#allocation3] }
  0x34   : > { %s348_s6 = sshll.u32 %s769_s7, 4  ;;  %s686_s8 = smov [#allocation2 + $0x2]  }
  0x35   : > { %s97_s9 = sshll.u32 %s686_s8, 4  ;;  %s70_s14 = scalar_lea.hbm %s936_s1, %s348_s6  ;;  %s801_s9 = int_to_ptr.vmem [resolvable:$true] %s97_s9 }
  0x36   : > { %s441_s16 = scalar_lea.hbm %s70_s14, 16  ;;  %p444_p12 = scmp.lt.u32.totalorder %s70_s14, %s936_s1 }
  0x37   : > { %p442_p11 = scmp.ne.s32.totalorder %s70_s14, %s441_s16  ;;  %p445_p13 = scmp.lt.u32.totalorder %s782_s0, %s441_s16 }
  0x38   : > { %p447_p1 = scmp.lt.u32.totalorder %s441_s16, %s70_s14 }
  0x39   : > { %p446_p0 = por %p445_p13, %p444_p12 }
  0x3b   : > { %p448_p2 = por %p447_p1, %p446_p0 }
  0x3d   : > { %p449_p3 = pnand %p448_p2, %p442_p11 }
  0x3f   : > { %452 = shalt.err (!%p449_p3)  }
  0x40   : > { %s453_s7 = scalar_lea.vmem %s774_s10, 16  ;;  %p458_p5 = scmp.lt.s32.totalorder %s774_s10, %s767_s5 }
  0x41   : > { %p454_p4 = scmp.ne.s32.totalorder %s774_s10, %s453_s7  ;;  %p459_p6 = scmp.lt.s32.totalorder %s791_s4, %s453_s7 }
  0x43   : > { %p460_p8 = por %p459_p6, %p458_p5 }
  0x45   : > { %p461_p10 = pnand %p460_p8, %p454_p4 }
  0x47   : > { %464 = shalt.err (!%p461_p10)  }
  0x48   : > { %83 = dma.hbm_to_vmem [thread:$0]  %s70_s14, 16, %s774_s10, [#allocation3 + $0x1] }
  0x49   : > { %s349_s15 = sshll.u32 %s772_s11, 4  ;;  %s101_s23 = sadd.s32 3, %s759_s29 }
  0x4a   : > { %s87_s6 = scalar_lea.hbm %s936_s1, %s349_s15  ;;  %s818_s8 = sld [smem:[#allocation5 + %s101_s23]] }
  0x4b   : > { %s465_s12 = scalar_lea.hbm %s87_s6, 16  ;;  %p468_p12 = scmp.lt.u32.totalorder %s87_s6, %s936_s1 }
  0x4c   : > { %p466_p11 = scmp.ne.s32.totalorder %s87_s6, %s465_s12  ;;  %p469_p13 = scmp.lt.u32.totalorder %s782_s0, %s465_s12 }
  0x4d   : > { %p471_p1 = scmp.lt.u32.totalorder %s465_s12, %s87_s6 }
  0x4e   : > { %p470_p0 = por %p469_p13, %p468_p12 }
  0x50   : > { %p472_p2 = por %p471_p1, %p470_p0 }
  0x52   : > { %p473_p3 = pnand %p472_p2, %p466_p11 }
  0x54   : > { %476 = shalt.err (!%p473_p3)  }
  0x55   : > { %s477_s10 = scalar_lea.vmem %s801_s9, 16  ;;  %p482_p5 = scmp.lt.s32.totalorder %s801_s9, %s767_s5 }
  0x56   : > { %p478_p4 = scmp.ne.s32.totalorder %s801_s9, %s477_s10  ;;  %p483_p6 = scmp.lt.s32.totalorder %s791_s4, %s477_s10 }
  0x58   : > { %p484_p8 = por %p483_p6, %p482_p5 }
  0x5a   : > { %p485_p10 = pnand %p484_p8, %p478_p4 }
  0x5c   : > { %488 = shalt.err (!%p485_p10)  }
  0x5d   : > { %100 = dma.hbm_to_vmem [thread:$0]  %s87_s6, 16, %s801_s9, [#allocation3 + $0x2] }
  0x5e   : > { %s118_s11 = sadd.s32 4, %s759_s29  ;;  %s687_s14 = smov [#allocation2 + $0x3]  }
  0x5f   : > { %s114_s17 = sshll.u32 %s687_s14, 4  ;;  %s119_s18 = sld [smem:[#allocation5 + %s118_s11]]  ;;  %s115_s17 = int_to_ptr.vmem [resolvable:$true] %s114_s17 }
  0x60   : > { %s688_s7 = smov [#allocation2 + $0x4]   ;;  %s135_s23 = sadd.s32 5, %s759_s29 }
  0x61   : > { %s131_s15 = sshll.u32 %s688_s7, 4  ;;  %s350_s24 = sshll.u32 %s818_s8, 4  ;;  %s833_s15 = int_to_ptr.vmem [resolvable:$true] %s131_s15 }
  0x62   : > { %s104_s13 = scalar_lea.hbm %s936_s1, %s350_s24  ;;  %s838_s16 = sld [smem:[#allocation5 + %s135_s23]] }
  0x63   : > { %s489_s10 = scalar_lea.hbm %s104_s13, 16  ;;  %p492_p12 = scmp.lt.u32.totalorder %s104_s13, %s936_s1 }
  0x64   : > { %p490_p11 = scmp.ne.s32.totalorder %s104_s13, %s489_s10  ;;  %p493_p13 = scmp.lt.u32.totalorder %s782_s0, %s489_s10 }
  0x65   : > { %p495_p1 = scmp.lt.u32.totalorder %s489_s10, %s104_s13 }
  0x66   : > { %p494_p0 = por %p493_p13, %p492_p12 }
  0x68   : > { %p496_p2 = por %p495_p1, %p494_p0 }
  0x6a   : > { %p497_p3 = pnand %p496_p2, %p490_p11 }
  0x6c   : > { %500 = shalt.err (!%p497_p3)  }
  0x6d   : > { %s501_s8 = scalar_lea.vmem %s115_s17, 16  ;;  %p506_p5 = scmp.lt.s32.totalorder %s115_s17, %s767_s5 }
  0x6e   : > { %p502_p4 = scmp.ne.s32.totalorder %s115_s17, %s501_s8  ;;  %p507_p6 = scmp.lt.s32.totalorder %s791_s4, %s501_s8 }
  0x70   : > { %p508_p8 = por %p507_p6, %p506_p5 }
  0x72   : > { %p509_p10 = pnand %p508_p8, %p502_p4 }
  0x74   : > { %512 = shalt.err (!%p509_p10)  }
  0x75   : > { %117 = dma.hbm_to_vmem [thread:$0]  %s104_s13, 16, %s115_s17, [#allocation3 + $0x3] }
  0x76   : > { %s351_s11 = sshll.u32 %s119_s18, 4  ;;  %s689_s24 = smov [#allocation2 + $0x5]  }
  0x77   : > { %s121_s23 = scalar_lea.hbm %s936_s1, %s351_s11  ;;  %s148_s3 = sshll.u32 %s689_s24, 4  ;;  %s149_s3 = int_to_ptr.vmem [resolvable:$true] %s148_s3 }
  0x78   : > { %s513_s12 = scalar_lea.hbm %s121_s23, 16  ;;  %p516_p12 = scmp.lt.u32.totalorder %s121_s23, %s936_s1 }
  0x79   : > { %p514_p11 = scmp.ne.s32.totalorder %s121_s23, %s513_s12  ;;  %p517_p13 = scmp.lt.u32.totalorder %s782_s0, %s513_s12 }
  0x7a   : > { %p519_p1 = scmp.lt.u32.totalorder %s513_s12, %s121_s23 }
  0x7b   : > { %p518_p0 = por %p517_p13, %p516_p12 }
  0x7d   : > { %p520_p2 = por %p519_p1, %p518_p0 }
  0x7f   : > { %p521_p3 = pnand %p520_p2, %p514_p11 }
  0x81   : > { %524 = shalt.err (!%p521_p3)  }
  0x82   : > { %s525_s17 = scalar_lea.vmem %s833_s15, 16  ;;  %p530_p5 = scmp.lt.s32.totalorder %s833_s15, %s767_s5 }
  0x83   : > { %p526_p4 = scmp.ne.s32.totalorder %s833_s15, %s525_s17  ;;  %p531_p6 = scmp.lt.s32.totalorder %s791_s4, %s525_s17 }
  0x85   : > { %p532_p8 = por %p531_p6, %p530_p5 }
  0x87   : > { %p533_p10 = pnand %p532_p8, %p526_p4 }
  0x89   : > { %536 = shalt.err (!%p533_p10)  }
  0x8a   : > { %134 = dma.hbm_to_vmem [thread:$0]  %s121_s23, 16, %s833_s15, [#allocation3 + $0x4] }
  0x8b   : > { %s152_s18 = sadd.s32 6, %s759_s29  ;;  %s352_s13 = sshll.u32 %s838_s16, 4 }
  0x8c   : > { %s153_s6 = sld [smem:[#allocation5 + %s152_s18]]  ;;  %s138_s14 = scalar_lea.hbm %s936_s1, %s352_s13 }
  0x8d   : > { %s537_s7 = scalar_lea.hbm %s138_s14, 16  ;;  %p540_p12 = scmp.lt.u32.totalorder %s138_s14, %s936_s1 }
  0x8e   : > { %p538_p11 = scmp.ne.s32.totalorder %s138_s14, %s537_s7  ;;  %p541_p13 = scmp.lt.u32.totalorder %s782_s0, %s537_s7 }
  0x8f   : > { %p543_p1 = scmp.lt.u32.totalorder %s537_s7, %s138_s14 }
  0x90   : > { %p542_p0 = por %p541_p13, %p540_p12 }
  0x92   : > { %p544_p2 = por %p543_p1, %p542_p0 }
  0x94   : > { %p545_p3 = pnand %p544_p2, %p538_p11 }
  0x96   : > { %548 = shalt.err (!%p545_p3)  }
  0x97   : > { %s549_s15 = scalar_lea.vmem %s149_s3, 16  ;;  %p554_p5 = scmp.lt.s32.totalorder %s149_s3, %s767_s5 }
  0x98   : > { %p550_p4 = scmp.ne.s32.totalorder %s149_s3, %s549_s15  ;;  %p555_p6 = scmp.lt.s32.totalorder %s791_s4, %s549_s15 }
  0x9a   : > { %p556_p8 = por %p555_p6, %p554_p5 }
  0x9c   : > { %p557_p10 = pnand %p556_p8, %p550_p4 }
  0x9e   : > { %560 = shalt.err (!%p557_p10)  }
  0x9f   : > { %151 = dma.hbm_to_vmem [thread:$0]  %s138_s14, 16, %s149_s3, [#allocation3 + $0x5] }
  0xa0   : > { %s690_s16 = smov [#allocation2 + $0x6]   ;;  %s169_s10 = sadd.s32 7, %s759_s29 }
  0xa1   : > { %s165_s23 = sshll.u32 %s690_s16, 4  ;;  %s170_s9 = sld [smem:[#allocation5 + %s169_s10]]  ;;  %s166_s23 = int_to_ptr.vmem [resolvable:$true] %s165_s23 }
  0xa2   : > { %s353_s17 = sshll.u32 %s153_s6, 4  ;;  %s691_s18 = smov [#allocation2 + $0x7]  }
  0xa3   : > { %s182_s13 = sshll.u32 %s691_s18, 4  ;;  %s155_s7 = scalar_lea.hbm %s936_s1, %s353_s17  ;;  %s183_s13 = int_to_ptr.vmem [resolvable:$true] %s182_s13 }
  0xa4   : > { %s561_s24 = scalar_lea.hbm %s155_s7, 16  ;;  %p564_p12 = scmp.lt.u32.totalorder %s155_s7, %s936_s1 }
  0xa5   : > { %p562_p11 = scmp.ne.s32.totalorder %s155_s7, %s561_s24  ;;  %p565_p13 = scmp.lt.u32.totalorder %s782_s0, %s561_s24 }
  0xa6   : > { %p567_p1 = scmp.lt.u32.totalorder %s561_s24, %s155_s7 }
  0xa7   : > { %p566_p0 = por %p565_p13, %p564_p12 }
  0xa9   : > { %p568_p2 = por %p567_p1, %p566_p0 }
  0xab   : > { %p569_p3 = pnand %p568_p2, %p562_p11 }
  0xad   : > { %572 = shalt.err (!%p569_p3)  }
  0xae   : > { %s573_s29 = scalar_lea.vmem %s166_s23, 16  ;;  %p578_p5 = scmp.lt.s32.totalorder %s166_s23, %s767_s5 }
  0xaf   : > { %p574_p4 = scmp.ne.s32.totalorder %s166_s23, %s573_s29  ;;  %p579_p6 = scmp.lt.s32.totalorder %s791_s4, %s573_s29 }
  0xb1   : > { %p580_p8 = por %p579_p6, %p578_p5 }
  0xb3   : > { %p581_p10 = pnand %p580_p8, %p574_p4 }
  0xb5   : > { %584 = shalt.err (!%p581_p10)  }
  0xb6   : > { %168 = dma.hbm_to_vmem [thread:$0]  %s155_s7, 16, %s166_s23, [#allocation3 + $0x6] }
  0xb7   : > { %s354_s3 = sshll.u32 %s170_s9, 4 }
  0xb8   : > { %s172_s16 = scalar_lea.hbm %s936_s1, %s354_s3 }
  0xb9   : > { %s585_s10 = scalar_lea.hbm %s172_s16, 16  ;;  %p588_p12 = scmp.lt.u32.totalorder %s172_s16, %s936_s1 }
  0xba   : > { %p586_p11 = scmp.ne.s32.totalorder %s172_s16, %s585_s10  ;;  %p589_p13 = scmp.lt.u32.totalorder %s782_s0, %s585_s10 }
  0xbb   : > { %p591_p1 = scmp.lt.u32.totalorder %s585_s10, %s172_s16 }
  0xbc   : > { %p590_p0 = por %p589_p13, %p588_p12 }
  0xbe   : > { %p592_p2 = por %p591_p1, %p590_p0 }
  0xc0   : > { %p593_p3 = pnand %p592_p2, %p586_p11 }
  0xc2   : > { %596 = shalt.err (!%p593_p3)  }
  0xc3   : > { %s597_s23 = scalar_lea.vmem %s183_s13, 16  ;;  %p602_p5 = scmp.lt.s32.totalorder %s183_s13, %s767_s5 }
  0xc4   : > { %p598_p4 = scmp.ne.s32.totalorder %s183_s13, %s597_s23  ;;  %p603_p6 = scmp.lt.s32.totalorder %s791_s4, %s597_s23 }
  0xc6   : > { %p604_p8 = por %p603_p6, %p602_p5 }
  0xc8   : > { %p605_p10 = pnand %p604_p8, %p598_p4 }
  0xca   : > { %608 = shalt.err (!%p605_p10)  }
  0xcb   : > { %185 = dma.hbm_to_vmem [thread:$0]  %s172_s16, 16, %s183_s13, [#allocation3 + $0x7] }
  0xcc   : > { %s51_s9 = scalar_lea.vmem [#allocation6], %s763_s30 }
  0xcd   : > { %651 = dma.done.wait [#allocation3], 16 }
  0xce   : > { %652 = vsyncadd [#allocation3], 4294967280 }
  0xcf   : > { %653 = dma.done.wait [#allocation3 + $0x1], 16 }
  0xd0   : > { %654 = vsyncadd [#allocation3 + $0x1], 4294967280 }
  0xd1   : > { %655 = dma.done.wait [#allocation3 + $0x2], 16 }
  0xd2   : > { %656 = vsyncadd [#allocation3 + $0x2], 4294967280 }
  0xd3   : > { %657 = dma.done.wait [#allocation3 + $0x3], 16 }
  0xd4   : > { %658 = vsyncadd [#allocation3 + $0x3], 4294967280 }
  0xd5   : > { %659 = dma.done.wait [#allocation3 + $0x4], 16 }
  0xd6   : > { %660 = vsyncadd [#allocation3 + $0x4], 4294967280 }
  0xd7   : > { %661 = dma.done.wait [#allocation3 + $0x5], 16 }
  0xd8   : > { %662 = vsyncadd [#allocation3 + $0x5], 4294967280 }
  0xd9   : > { %663 = dma.done.wait [#allocation3 + $0x6], 16 }
  0xda   : > { %664 = vsyncadd [#allocation3 + $0x6], 4294967280 }
  0xdb   : > { %665 = dma.done.wait [#allocation3 + $0x7], 16 }
  0xdc   : > { %666 = vsyncadd [#allocation3 + $0x7], 4294967280  ;;  %s356_s30 = sshll.u32 %s681_s21, 7  ;;  %s228_s5 = sshll.u32 %s51_s9, 4  ;;  %v211_v0 = vld [vmem:[#allocation2] sm:$0xff]  ;;  %s896_s5 = int_to_ptr.vmem [resolvable:$true] %s228_s5 }
  0xdd   : > { %v212_v1 = vmul.f32 11.313708, %v211_v0  ;;  %s894_s13 = scalar_lea.hbm %s937_s2, %s356_s30  ;;  %s215_s8 = scalar_lea.sflag [#allocation7], %s49_s28 }
  0xde   : > { %s609_s11 = scalar_lea.vmem %s896_s5, 128  ;;  %s692_s7 = smov [#allocation6]  }
  0xdf   : > { %213 = vst [vmem:[%s51_s9] sm:$0xff] %v212_v1  ;;  %p610_p11 = scmp.ne.s32.totalorder %s896_s5, %s609_s11  ;;  %s613_s24 = sshll.u32 %s692_s7, 4  ;;  %s614_s24 = int_to_ptr.vmem [resolvable:$false] %s613_s24 }
  0xe0   : > { %s615_s12 = scalar_lea.vmem %s614_s24, 256  ;;  %p616_p0 = scmp.lt.s32.totalorder %s896_s5, %s614_s24 }
  0xe1   : > { %p611_p12 = pnand %p610_p11, %p748_p7  ;;  %p617_p1 = scmp.lt.s32.totalorder %s615_s12, %s609_s11 }
  0xe3   : > { %p612_p13 = pneg %p611_p12  ;;  %p618_p2 = por %p617_p1, %p616_p0 }
  0xe5   : > { %p619_p3 = pnand %p618_p2, %p612_p13 }
  0xe7   : > { %622 = shalt.err (!%p619_p3)
}
  0xe8   : > { %s623_s28 = scalar_lea.hbm %s894_s13, 128  ;;  %s627_s3 = scalar_lea.hbm %s937_s2, 256 }
  0xe9   : > { %p624_p4 = scmp.ne.s32.totalorder %s894_s13, %s623_s28  ;;  %p628_p8 = scmp.lt.u32.totalorder %s894_s13, %s937_s2 }
  0xea   : > { %p629_p10 = scmp.lt.u32.totalorder %s627_s3, %s623_s28  ;;  %p631_p12 = scmp.lt.u32.totalorder %s623_s28, %s894_s13 }
  0xeb   : > { %p625_p5 = pnand %p624_p4, %p748_p7 }
  0xec   : > { %p630_p11 = por %p629_p10, %p628_p8 }
  0xed   : > { %p626_p6 = pneg %p625_p5 }
  0xee   : > { %p632_p13 = por %p631_p12, %p630_p11 }
  0xf0   : > { %p633_p0 = pnand %p632_p13, %p626_p6 }
  0xf2   : > { %636 = shalt.err (!%p633_p0)
}
  0xf3   : > { %367 = dma.vmem_to_hbm [thread:$0]  (%p748_p7), %s896_s5, 128, %s894_s13, %s215_s8  }
  0xf4 PF: > { %p373_p1 = scmp.ge.s32.totalorder %s681_s21, 1  ;;  %s240_s16 = sand.u32 1, %s673_s19  }
  0xf5   : > { %s241_s10 = scalar_lea.sflag [#allocation7], %s240_s16 }
  0xf6   : > { %p370_p2 = pnand %p373_p1, %p752_p9 }
  0xf8   : > { %668 = dma.done.wait (!%p370_p2), %s241_s10, 128  }
  0xf9   : > { %670 = vsyncadd (!%p370_p2), %s241_s10, 4294967168  ;;  %p16_p3 = scmp.ge.s32.totalorder %s737_s22, 3   ;;  %s940_s19 = smov %s677_s20 }
  0xfa   : > { %s941_s20 = smov %s746_s25  ;;  %s942_s21 = smov %s737_s22 }
  0xfb   :  { %18 = sbr.rel (!%p16_p3) target bundleno = 15 (0xf), region = 105 }
 0x102   :  { %246 = vsyncpa [#allocation7], 1 }
 0x103   :  { %248 = vsyncpa [#allocation7 + $0x1], 1 }
 0x104   :  { %249 = vsyncmov [#allocation3] }
 0x107   :  { %s250_s21 = vpop.sfrf %249 }
 0x108   :  { %p359_p7 = scmp.ne.s32.totalorder %s250_s21, 0 }
 0x10a   :  { %254 = shalt.err (%p359_p7)  }
 0x10b   :  { %256 = vsyncmov [#allocation3 + $0x1] }
 0x10e   :  { %s257_s26 = vpop.sfrf %256 }
 0x10f   :  { %p360_p9 = scmp.ne.s32.totalorder %s257_s26, 0 }
 0x111   :  { %261 = shalt.err (%p360_p9)  }
 0x112   :  { %263 = vsyncmov [#allocation3 + $0x2] }
 0x115   :  { %s264_s27 = vpop.sfrf %263 }
 0x116   :  { %p361_p4 = scmp.ne.s32.totalorder %s264_s27, 0 }
 0x118   :  { %268 = shalt.err (%p361_p4)  }
 0x119   :  { %270 = vsyncmov [#allocation3 + $0x3] }
 0x11c   :  { %s271_s17 = vpop.sfrf %270 }
 0x11d   :  { %p362_p5 = scmp.ne.s32.totalorder %s271_s17, 0 }
 0x11f   :  { %275 = shalt.err (%p362_p5)  }
 0x120   :  { %277 = vsyncmov [#allocation3 + $0x4] }
 0x123   :  { %s278_s22 = vpop.sfrf %277 }
 0x124   :  { %p363_p6 = scmp.ne.s32.totalorder %s278_s22, 0 }
 0x126   :  { %282 = shalt.err (%p363_p6)  }
 0x127   :  { %284 = vsyncmov [#allocation3 + $0x5] }
 0x12a   :  { %s285_s1 = vpop.sfrf %284 }
 0x12b   :  { %p364_p8 = scmp.ne.s32.totalorder %s285_s1, 0 }
 0x12d   :  { %289 = shalt.err (%p364_p8)  }
 0x12e   :  { %291 = vsyncmov [#allocation3 + $0x6] }
 0x131   :  { %s292_s2 = vpop.sfrf %291 }
 0x132   :  { %p365_p10 = scmp.ne.s32.totalorder %s292_s2, 0 }
 0x134   :  { %296 = shalt.err (%p365_p10)  }
 0x135   :  { %298 = vsyncmov [#allocation3 + $0x7] }
 0x138   :  { %s299_s19 = vpop.sfrf %298 }
 0x139   :  { %p366_p11 = scmp.ne.s32.totalorder %s299_s19, 0 }
 0x13b   :  { %303 = shalt.err (%p366_p11)  }

</bundles_post_ra>
